<compile_context>
chip_gen: v5e
topology: v5e:2x2
jax: 0.10.0
libtpu: 0.0.40
codegen_flags: <defaults>
</compile_context>

<pallas_src>
import functools

import jax
import jax.numpy as jnp
import numpy as np
from jax.experimental import pallas as pl
from jax.experimental.pallas import tpu as pltpu


def _pooling_attention_kernel(x_ref, wt_ref, mask_ref, b_ref, o_ref, *, W, K, NP):
    # x_ref   : (C, N*P)    VMEM  (lane axis = N*H*W, lane-dense)
    # wt_ref  : (K*K, C)    VMEM  wt[kh*K + kw, c] = conv_weight[0, c, kh, kw]
    # mask_ref: (K*K, N*P)  VMEM  source-coordinate validity mask (0.0 / 1.0)
    # b_ref   : (1,)        SMEM  conv bias (scalar)
    # o_ref   : (1, N*P)    VMEM  ReLU(conv) output (single channel)
    pad = K // 2

    # All K*K per-tap channel contractions for all images: one MXU matmul.
    z = jnp.dot(wt_ref[...], x_ref[...],
                preferred_element_type=jnp.float32)          # (K*K, N*P)

    # Zero-padding borders: one full-block vectorized mask application.
    z = z * mask_ref[...]

    # Align each tap row with its output position (XLU lane rolls), then
    # combine all taps with a log-depth tree-sum instead of a serial chain.
    rows = []
    for kh in range(K):
        for kw in range(K):
            t = kh * K + kw
            off = (kh - pad) * W + (kw - pad)                 # flattened offset
            zt = z[t:t + 1, :]                                # (1, N*P)
            if off != 0:
                # rolled[p] == z[t, p + off]; out-of-image taps already zeroed.
                zt = pltpu.roll(zt, shift=(-off) % NP, axis=1)
            rows.append(zt)
    while len(rows) > 1:
        nxt = [rows[i] + rows[i + 1] for i in range(0, len(rows) - 1, 2)]
        if len(rows) % 2:
            nxt.append(rows[-1])
        rows = nxt

    acc = rows[0] + b_ref[0]
    o_ref[...] = jnp.maximum(acc, 0.0)                        # ReLU, one store


def pooling_attention_pallas(x_nchw, weight_oihw, bias, kernel_size):
    N, C, H, W = x_nchw.shape
    K = kernel_size
    pad = K // 2
    P = H * W
    NP = N * P
    assert weight_oihw.shape == (1, C, K, K)

    # Fold batch into the lane axis: (N, C, H, W) -> (C, N*H*W).
    # 64 KiB of layout plumbing outside the kernel — effectively free.
    x_cp = jnp.transpose(x_nchw, (1, 0, 2, 3)).reshape(C, NP)

    # One-time tiny weight repack: (1, C, K, K) -> (K*K, C).
    wt = jnp.transpose(weight_oihw[0], (1, 2, 0)).reshape(K * K, C)
    wt = wt.astype(jnp.float32)
    b = bias.reshape(1).astype(jnp.float32)

    # Precompute the (K*K, N*P) validity mask in SOURCE coordinates, i.e.
    # mask[t, q] = 1 iff source pixel q feeds an in-image output for tap t.
    # Applying it to z before the rolls is equivalent to masking the rolled
    # rows in output coordinates (and makes cross-image roll wrap harmless).
    q = np.arange(NP)
    row = (q % P) // W
    col = q % W
    mask_np = np.empty((K * K, NP), dtype=np.float32)
    for kh in range(K):
        for kw in range(K):
            dh, dw = kh - pad, kw - pad
            ok = ((row - dh >= 0) & (row - dh < H) &
                  (col - dw >= 0) & (col - dw < W))
            mask_np[kh * K + kw] = ok.astype(np.float32)
    mask = jnp.asarray(mask_np)

    out_flat = pl.pallas_call(
        functools.partial(_pooling_attention_kernel, W=W, K=K, NP=NP),
        out_shape=jax.ShapeDtypeStruct((1, NP), jnp.float32),
        in_specs=[
            pl.BlockSpec(memory_space=pltpu.MemorySpace.VMEM),   # x    (C, N*P)
            pl.BlockSpec(memory_space=pltpu.MemorySpace.VMEM),   # wt   (K*K, C)
            pl.BlockSpec(memory_space=pltpu.MemorySpace.VMEM),   # mask (K*K, N*P)
            pl.BlockSpec(memory_space=pltpu.MemorySpace.SMEM),   # bias (1,)
        ],
        out_specs=pl.BlockSpec(memory_space=pltpu.MemorySpace.VMEM),
    )(x_cp, wt, mask, b)

    # (1, N*P) -> (N, 1, H, W): pure reshape, no data movement.
    return out_flat.reshape(N, 1, H, W)


def pooling_attention_reference(x_nchw, weight_oihw, bias, kernel_size):
    """Pure-JAX NCHW reference faithful to the PyTorch module."""
    pad = kernel_size // 2
    y = jax.lax.conv_general_dilated(
        x_nchw, weight_oihw, (1, 1), [(pad, pad), (pad, pad)],
        dimension_numbers=('NCHW', 'OIHW', 'NCHW'),
        precision=jax.lax.Precision.HIGHEST)
    y = y + bias[None, :, None, None]
    return jnp.maximum(y, 0.0)


if __name__ == "__main__":
    N_, C_, H_, W_ = 2, 32, 16, 16

    key = jax.random.PRNGKey(0)
    kx, kp = jax.random.split(key)
    x = jax.random.normal(kx, (N_, C_, H_, W_), jnp.float32)

    # Exercise the kernel sizes the module is used with (1 is the default).
    for i, ksize in enumerate((1, 3, 5)):
        kw_key, kb_key = jax.random.split(jax.random.fold_in(kp, i))
        weight = jax.random.normal(kw_key, (1, C_, ksize, ksize),
                                   jnp.float32) * 0.2
        bias = jax.random.normal(kb_key, (1,), jnp.float32) * 0.1

        out = pooling_attention_pallas(x, weight, bias, ksize)
        out = jax.block_until_ready(out)
        assert out.shape == (N_, 1, H_, W_)

        ref = pooling_attention_reference(x, weight, bias, ksize)
        np.testing.assert_allclose(np.asarray(out), np.asarray(ref),
                                   atol=5e-3, rtol=5e-3)

    print("KERNEL_OK")
</pallas_src>

<mosaic_0001>
module attributes {stable_mosaic.version = 11 : i64} {
  func.func @_pooling_attention_kernel(%arg0: memref<32x512xf32, #tpu.memory_space<vmem>>, %arg1: memref<1x32xf32, #tpu.memory_space<vmem>>, %arg2: memref<1x512xf32, #tpu.memory_space<vmem>>, %arg3: memref<1xf32, #tpu.memory_space<smem>>, %arg4: memref<1x512xf32, #tpu.memory_space<vmem>>) attributes {dimension_semantics = [], scalar_prefetch = 0 : i64, scratch_operands = 0 : i64, tpu.core_type = #tpu.core_type<tc>} {
    %c0 = arith.constant 0 : index
    %c0_0 = arith.constant 0 : index
    %0 = vector.load %arg1[%c0, %c0_0] : memref<1x32xf32, #tpu.memory_space<vmem>>, vector<1x32xf32>
    %c0_1 = arith.constant 0 : index
    %c0_2 = arith.constant 0 : index
    %1 = vector.load %arg0[%c0_1, %c0_2] : memref<32x512xf32, #tpu.memory_space<vmem>>, vector<32x512xf32>
    %cst = arith.constant dense<0.000000e+00> : vector<1x512xf32>
    %2 = tpu.matmul %0, %1, %cst {dimension_numbers = #tpu.dot_dimension_numbers<[1], [0], [0], [1], [0, 0, 1, 1], [], []>} : vector<1x32xf32>, vector<32x512xf32>, vector<1x512xf32> -> vector<1x512xf32>
    %c0_3 = arith.constant 0 : index
    %c0_4 = arith.constant 0 : index
    %3 = vector.load %arg2[%c0_3, %c0_4] : memref<1x512xf32, #tpu.memory_space<vmem>>, vector<1x512xf32>
    %4 = arith.mulf %2, %3 : vector<1x512xf32>
    %c0_5 = arith.constant 0 : index
    %5 = memref.load %arg3[%c0_5] : memref<1xf32, #tpu.memory_space<smem>>
    %6 = vector.broadcast %5 : f32 to vector<1x512xf32>
    %7 = arith.addf %4, %6 : vector<1x512xf32>
    %cst_6 = arith.constant 0.000000e+00 : f32
    %8 = vector.broadcast %cst_6 : f32 to vector<1x512xf32>
    %9 = arith.maximumf %7, %8 : vector<1x512xf32>
    %c0_7 = arith.constant 0 : index
    %c0_8 = arith.constant 0 : index
    %10 = vector.load %arg4[%c0_7, %c0_8] : memref<1x512xf32, #tpu.memory_space<vmem>>, vector<1x512xf32>
    tpu.vector_store %arg4[%c0_7, %c0_8], %9 {strides = array<i32>} : memref<1x512xf32, #tpu.memory_space<vmem>>, vector<1x512xf32>,
    return
  }
}

</mosaic_0001>

<bundles_post_ra>
// kernel: tpu_custom_call.1
= control target key start
LH: loop header
LB: loop body
LE: loop exit
PB: predicated region body
PF: predicated region fallthrough
CT: control target
= control target key end

     0   :  { %10 = vsyncpa [#allocation4], 0  ;;  %s347_s0 = inlined_call_operand.hbm [shape: f32[32,512], index: 0, kind: input, shape index: {}]   ;;  %s348_s1 = inlined_call_operand.vmem [shape: f32[1,32], index: 1, kind: input, shape index: {}]   ;;  %s349_s2 = inlined_call_operand.hbm [shape: f32[1,512], index: 2, kind: input, shape index: {}]   ;;  %s350_s3 = inlined_call_operand.<no memory space> [shape: f32[1], index: 3, kind: input, shape index: {}]   ;;  %s351_s4 = inlined_call_operand.hbm [shape: f32[1,512], index: 4, kind: output, shape index: {}]  }
   0x1   :  { %11 = vsyncpa [#allocation7], 0 }
   0x2   :  { %12 = vsyncpa [#allocation5], 0  ;;  %s17_s17 = sshll.u32 %s347_s0, 4  ;;  %s298_s18 = smov [#allocation3]   ;;  %s18_s17 = int_to_ptr.hbm [resolvable:$true] %s17_s17 }
   0x3   :  { %s19_s19 = sshll.u32 %s298_s18, 4  ;;  %s33_s22 = sshll.u32 %s349_s2, 4  ;;  %s20_s19 = int_to_ptr.vmem [resolvable:$true] %s19_s19  ;;  %s34_s22 = int_to_ptr.hbm [resolvable:$true] %s33_s22 }
   0x4   :  { %s299_s23 = smov 512   ;;  %s300_s24 = smov 32  }
   0x5   :  { %25 = dma.hbm_to_vmem [thread:$0]  %s18_s17, 2048, %s20_s19, [#allocation4], %s299_s23, %s299_s23, %s300_s24  }
   0x6   :  { %s301_s25 = smov [#allocation6]  }
   0x7   :  { %s35_s26 = sshll.u32 %s301_s25, 4  ;;  %s36_s26 = int_to_ptr.vmem [resolvable:$true] %s35_s26 }
   0x8   :  { %38 = dma.hbm_to_vmem [thread:$0]  %s34_s22, 64, %s36_s26, [#allocation7]  }
   0x9   :  { %292 = dma.done.wait [#allocation4], 2048  }
   0xa   :  { %293 = vsyncadd [#allocation4], 4294965248 }
   0xb   :  { %294 = dma.done.wait [#allocation7], 64  }
   0xc   :  { %295 = vsyncadd [#allocation7], 4294967232  ;;  %v64_v0 = vld [vmem:[#allocation3 + $0x70] sm:$0xff]  ;;  %v65_v1 = vld [vmem:[#allocation3 + $0x78] sm:$0xff]  ;;  %vm66_vm0 = vcmask 261120   ;;  %v165_v23 = vstv %s350_s3  ;;  %vm181_vm1 = vcmask 1040384   ;;  %v188_v37 = vlaneseq }
   0xd   :  { %v60_v2 = vld [vmem:[#allocation3 + $0x50] sm:$0xff]  ;;  %122 = vmatpush.msra.mxu2 %v64_v0  ;;  %142 = vmatpush.msra.mxu3 %v65_v1  ;;  %v61_v3 = vld [vmem:[#allocation3 + $0x58] sm:$0xff]  ;;  %v63_v6 = vld [vmem:[#allocation3 + $0x68] sm:$0xff]  ;;  %vm183_vm2 = vcmask 1042434   ;;  %s302_s3 = smov [#allocation8]   ;;  %s200_s5 = sshll.u32 %s351_s4, 4  ;;  %s201_s5 = int_to_ptr.hbm [resolvable:$true] %s200_s5 }
   0xe   :  { %v56_v4 = vld [vmem:[#allocation3 + $0x30] sm:$0xff]  ;;  %v57_v5 = vld [vmem:[#allocation3 + $0x38] sm:$0xff]  ;;  %v62_v7 = vld [vmem:[#allocation3 + $0x60] sm:$0xff]  ;;  %102 = vmatpush.msra.mxu1 %v63_v6  ;;  %s198_s28 = sshll.u32 %s302_s3, 4  ;;  %vm185_vm3 = vcmask 1041408   ;;  %vm190_vm4 = vcmp.lt.s32.totalorder %v188_v37, 512  ;;  %s199_s28 = int_to_ptr.vmem [resolvable:$true] %s198_s28 }
   0xf   :  { %123 = vmatpush.msra.mxu2 %v60_v2  ;;  %143 = vmatpush.msra.mxu3 %v61_v3  ;;  %v59_v8 = vld [vmem:[#allocation3 + $0x48] sm:$0xff]  ;;  %v52_v9 = vld [vmem:[#allocation3 + $0x10] sm:$0xff]  ;;  %v53_v10 = vld [vmem:[#allocation3 + $0x18] sm:$0xff] }
  0x10   :  { %82 = vmatpush.msra.mxu0 %v62_v7  ;;  %v58_v11 = vld [vmem:[#allocation3 + $0x40] sm:$0xff]  ;;  %103 = vmatpush.msra.mxu1 %v59_v8  ;;  %v55_v13 = vld [vmem:[#allocation3 + $0x28] sm:$0xff] }
  0x11   :  { %124 = vmatpush.msra.mxu2 %v56_v4  ;;  %144 = vmatpush.msra.mxu3 %v57_v5  ;;  %v49_v12 = vld [vmem:[%s348_s1] sm:$0x1]  ;;  %v51_v15 = vld [vmem:[#allocation3 + $0x8] sm:$0xff] }
  0x12   :  { %83 = vmatpush.msra.mxu0 %v58_v11  ;;  %v54_v14 = vld [vmem:[#allocation3 + $0x20] sm:$0xff]  ;;  %104 = vmatpush.msra.mxu1 %v55_v13 }
  0x13   :  { %125 = vmatpush.msra.mxu2 %v52_v9  ;;  %145 = vmatpush.msra.mxu3 %v53_v10  ;;  %v50_v16 = vld [vmem:[#allocation3] sm:$0xff] }
  0x14   :  { %213 = vmatmul.msk.f32.vlgmr.msra.gmra.mxu2 %vm66_vm0, %v49_v12  ;;  %214 = vmatmul.msk.f32.vlgmr.msra.gmra.mxu3 %vm66_vm0, %v49_v12  ;;  %v150_v17 = vld [vmem:[#allocation6] sm:$0xf] }
  0x15   :  { %84 = vmatpush.msra.mxu0 %v54_v14  ;;  %105 = vmatpush.msra.mxu1 %v51_v15  ;;  %v153_v18 = vperm.slane %v150_v17, 1  ;;  %v152_v19 = vperm.slane %v150_v17, 0  ;;  %v154_v20 = vperm.slane %v150_v17, 2  ;;  %v155_v21 = vperm.slane %v150_v17, 3 }
  0x16   :  { %212 = vmatmul.msk.f32.vlgmr.msra.gmra.mxu1 %vm66_vm0, %v49_v12 }
  0x17   :  { %85 = vmatpush.msra.mxu0 %v50_v16 }
  0x18   :  { %211 = vmatmul.msk.f32.vlgmr.msra.gmra.mxu0 %vm66_vm0, %v49_v12 }
  0x93   :  { %v107_v22 = vpop.f32.mrf.mxu1 }
  0x94   :  { %v161_v25 = vmul.f32 %v153_v18, %v107_v22 }
  0x95   :  { %v87_v24 = vpop.f32.mrf.mxu0 }
  0x96   :  { %v160_v26 = vmul.f32 %v152_v19, %v87_v24  ;;  %v167_v29 = vadd.f32 %v165_v23, %v161_v25 }
  0x97   :  { %v127_v27 = vpop.f32.mrf.mxu2  ;;  %v147_v28 = vpop.f32.mrf.mxu3 }
  0x98   :  { %v162_v30 = vmul.f32 %v154_v20, %v127_v27  ;;  %v163_v31 = vmul.f32 %v155_v21, %v147_v28  ;;  %v166_v32 = vadd.f32 %v165_v23, %v160_v26  ;;  %v171_v33 = vmax.f32 %v167_v29, 0.0 }
  0x9a   :  { %v168_v34 = vadd.f32 %v165_v23, %v162_v30  ;;  %v169_v35 = vadd.f32 %v165_v23, %v163_v31  ;;  %v170_v36 = vmax.f32 %v166_v32, 0.0  ;;  %v178_v38 = vrot.slane %v171_v33, 7 }
  0x9c   :  { %v172_v39 = vmax.f32 %v168_v34, 0.0  ;;  %v173_v40 = vmax.f32 %v169_v35, 0.0  ;;  %v182_v43 = vsel %vm181_vm1, %v170_v36, %v178_v38 }
  0x9e   :  { %v179_v41 = vrot.slane %v172_v39, 6  ;;  %v180_v42 = vrot.slane %v173_v40, 5 }
  0xa0   :  { %v184_v44 = vsel %vm183_vm2, %v179_v41, %v180_v42 }
  0xa1   :  { %v186_v45 = vsel %vm185_vm3, %v182_v43, %v184_v44 }
  0xa2   :  { %192 = vst.msk [vmem:[#allocation8] sm:$0xf] %vm190_vm4, %v186_v45 }
  0xa3   :  { %203 = dma.vmem_to_hbm [thread:$0]  %s199_s28, 64, %s201_s5, [#allocation5]  }
  0xa4   :  { %296 = dma.done.wait [#allocation5], 64  }
  0xa5   :  { %297 = vsyncadd [#allocation5], 4294967232 }
  0xa6   :  { %208 = vsyncpa [#allocation4], 1 }
  0xa7   :  { %209 = vsyncpa [#allocation7], 1 }
  0xa8   :  { %210 = vsyncpa [#allocation5], 1 }

</bundles_post_ra>
